<compile_context>
chip_gen: v7x
topology: tpu7x:2x2x1
jax: 0.10.0
libtpu: 0.0.40
codegen_flags: <defaults>
</compile_context>

<pallas_src>
import jax
import jax.numpy as jnp
from jax.experimental import pallas as pl
from jax.experimental.pallas import tpu as pltpu


def _round_up(x, m):
    return ((x + m - 1) // m) * m


def _num_tensorcores():
    """2 TensorCores per chip on v7x, 1 on v5e/v6e."""
    try:
        kind = jax.devices()[0].device_kind.lower()
    except Exception:
        return 1
    return 2 if ("v7" in kind or "7x" in kind) else 1


def _qnet_kernel(sT_ref, aT_ref,
                 w1s_ref, w1a_ref, b1_ref,
                 w2_ref, b2_ref,
                 w3T_ref, b3_ref,
                 out_ref):
    # Dot-operand dtype is whatever the (once-cast) weights carry (f32 or bf16).
    cdt = w1s_ref.dtype
    sT = sT_ref[...].astype(cdt)                       # (ni, tile)
    aT = aT_ref[...].astype(cdt)                       # (na, tile)

    # Layer 1 (concat-free, transposed): h1 = relu(W1s @ s^T + W1a @ a^T + b1)
    # W1s=(H,ni), W1a=(H,na)  ->  (H, tile); f32 MXU accumulation.
    h1 = (jnp.dot(w1s_ref[...], sT, preferred_element_type=jnp.float32)
          + jnp.dot(w1a_ref[...], aT, preferred_element_type=jnp.float32)
          + b1_ref[...])
    h1 = jnp.maximum(h1, 0.0)

    # Layer 2: (H, H) @ (H, tile) -> (H, tile).
    h2 = (jnp.dot(w2_ref[...], h1.astype(cdt), preferred_element_type=jnp.float32)
          + b2_ref[...])
    h2 = jnp.maximum(h2, 0.0)

    # Layer 3 has a single output unit: VPU multiply + sublane reduce gives the
    # lane-dense (1, tile) row directly, keeping the MXU out of it.  w3T=(H,1).
    q = jnp.sum(h2 * w3T_ref[...], axis=0, keepdims=True) + b3_ref[...]
    out_ref[...] = q.astype(out_ref.dtype)             # (1, tile), unmasked vst


def soft_q_forward(state, action, params, *, batch_tile=512):
    """state: (B, num_inputs) f32, action: (B, num_actions) f32 -> (B, 1) f32.

    params = (w1s, w1a, b1, w2, b2, w3T, b3) in torch (out, in) layout; see
    init_params().  Weight matrices may already be bf16 (cast_dot_operands).
    """
    w1s, w1a, b1, w2, b2, w3T, b3 = params
    B = state.shape[0]
    ni = state.shape[1]
    na = action.shape[1]
    H = w1s.shape[0]

    # --- batch tile / grid selection -------------------------------------
    num_cores = _num_tensorcores()
    B128 = _round_up(B, 128)
    tile = max(128, _round_up(batch_tile, 128))
    if num_cores >= 2 and B128 >= 2 * 128:
        # Even split so both TensorCores get >= 128 real rows.
        tile = min(tile, _round_up(B128 // 2, 128))
    else:
        # Single TC: one grid step whenever the batch fits in one tile.
        tile = min(tile, B128)
    B_pad = _round_up(B, tile)

    # Transposed, lane-dense activation layout: (features, batch).
    sT = state.T
    aT = action.T
    if B_pad != B:
        pad = B_pad - B
        sT = jnp.pad(sT, ((0, 0), (0, pad)))
        aT = jnp.pad(aT, ((0, 0), (0, pad)))

    grid = (B_pad // tile,)

    out = pl.pallas_call(
        _qnet_kernel,
        out_shape=jax.ShapeDtypeStruct((1, B_pad), jnp.float32),
        grid_spec=pltpu.PrefetchScalarGridSpec(
            num_scalar_prefetch=0,
            grid=grid,
            in_specs=[
                # batch-tiled, transposed activations (features on sublanes)
                pl.BlockSpec((ni, tile), lambda i: (0, i)),
                pl.BlockSpec((na, tile), lambda i: (0, i)),
                # weights / biases: same full block at every grid step
                pl.BlockSpec((H, ni), lambda i: (0, 0)),
                pl.BlockSpec((H, na), lambda i: (0, 0)),
                pl.BlockSpec((H, 1), lambda i: (0, 0)),
                pl.BlockSpec((H, H), lambda i: (0, 0)),
                pl.BlockSpec((H, 1), lambda i: (0, 0)),
                pl.BlockSpec((H, 1), lambda i: (0, 0)),   # w3 as (H, 1) column
                pl.BlockSpec((1, 1), lambda i: (0, 0)),
            ],
            # lane-dense output slab: (1, B_pad) with the batch on lanes.
            out_specs=pl.BlockSpec((1, tile), lambda i: (0, i)),
        ),
        compiler_params=pltpu.CompilerParams(
            dimension_semantics=("parallel",)),
    )(sT, aT, w1s, w1a, b1, w2, b2, w3T, b3)

    return out[0, :B].reshape(B, 1)


def cast_dot_operands(params, dtype=jnp.bfloat16):
    """One-time (outside the per-call path) cast of the MXU dot operands.

    Biases and the layer-3 column stay f32 (VPU/epilogue path)."""
    w1s, w1a, b1, w2, b2, w3T, b3 = params
    return (w1s.astype(dtype), w1a.astype(dtype), b1,
            w2.astype(dtype), b2, w3T, b3)


def init_params(key, num_inputs, num_actions, hidden_size, init_w=0.003):
    """Deterministic PyTorch-style init in torch (out, in) weight layout.

    Returns (w1s, w1a, b1, w2, b2, w3T, b3) with
      w1s=(H, ni), w1a=(H, na), b1=(H,1), w2=(H,H), b2=(H,1), w3T=(H,1), b3=(1,1).
    """
    ks = jax.random.split(key, 6)
    in1 = num_inputs + num_actions
    H = hidden_size

    def torch_linear_init(kw, kb, fan_in, fan_out):
        bound = 1.0 / jnp.sqrt(jnp.float32(fan_in))
        w = jax.random.uniform(kw, (fan_out, fan_in), jnp.float32, -bound, bound)
        b = jax.random.uniform(kb, (fan_out, 1), jnp.float32, -bound, bound)
        return w, b

    w1, b1 = torch_linear_init(ks[0], ks[1], in1, H)           # (H, ni+na)
    w2, b2 = torch_linear_init(ks[2], ks[3], H, H)             # (H, H)
    # linear3: uniform(-init_w, init_w) as in the module's __init__.
    w3 = jax.random.uniform(ks[4], (1, H), jnp.float32, -init_w, init_w)
    b3 = jax.random.uniform(ks[5], (1, 1), jnp.float32, -init_w, init_w)

    w1s = w1[:, :num_inputs]       # columns of W1 that multiply `state`
    w1a = w1[:, num_inputs:]       # columns of W1 that multiply `action`
    w3T = w3.T                     # (H, 1) column for the VPU reduce
    return (w1s, w1a, b1, w2, b2, w3T, b3)


def reference_forward(state, action, params):
    """Pure-JAX reference matching the PyTorch forward."""
    w1s, w1a, b1, w2, b2, w3T, b3 = params
    x = jnp.concatenate([state, action], axis=1)
    w1 = jnp.concatenate([w1s, w1a], axis=1)                   # (H, ni+na) torch layout
    h1 = jnp.maximum(x @ w1.T + b1[:, 0], 0.0)
    h2 = jnp.maximum(h1 @ w2.T + b2[:, 0], 0.0)
    return h2 @ w3T + b3                                       # (B, 1)


if __name__ == "__main__":
    B, num_inputs, num_actions, hidden = 256, 16, 8, 32

    key = jax.random.PRNGKey(0)
    k_state, k_action, k_params = jax.random.split(key, 3)

    state = jax.random.normal(k_state, (B, num_inputs), jnp.float32)
    action = jax.random.normal(k_action, (B, num_actions), jnp.float32)
    params = init_params(k_params, num_inputs, num_actions, hidden)

    q_ref = reference_forward(state, action, params)

    # f32 path (tight tolerance).
    q = jax.block_until_ready(soft_q_forward(state, action, params))
    assert q.shape == (B, 1)
    assert jnp.allclose(q, q_ref, atol=2e-5, rtol=1e-4), "f32 mismatch vs reference"

    # bf16 dot-operand path: weights cast ONCE outside the per-call path;
    # activations are cast inside the kernel; accumulation stays f32.
    params_bf16 = cast_dot_operands(params, jnp.bfloat16)
    q_bf16 = jax.block_until_ready(soft_q_forward(state, action, params_bf16))
    assert q_bf16.shape == (B, 1)
    assert jnp.allclose(q_bf16, q_ref, atol=2e-3, rtol=5e-2), "bf16 mismatch vs reference"

    print("KERNEL_OK")
</pallas_src>

<mosaic_0001>
module attributes {stable_mosaic.version = 11 : i64} {
  func.func @_qnet_kernel(%arg0: i32, %arg1: memref<16x256xf32, #tpu.memory_space<vmem>>, %arg2: memref<8x256xf32, #tpu.memory_space<vmem>>, %arg3: memref<32x16xf32, #tpu.memory_space<vmem>>, %arg4: memref<32x8xf32, #tpu.memory_space<vmem>>, %arg5: memref<32x1xf32, #tpu.memory_space<vmem>>, %arg6: memref<32x32xf32, #tpu.memory_space<vmem>>, %arg7: memref<32x1xf32, #tpu.memory_space<vmem>>, %arg8: memref<32x1xf32, #tpu.memory_space<vmem>>, %arg9: memref<1x1xf32, #tpu.memory_space<vmem>>, %arg10: memref<1x256xf32, #tpu.memory_space<vmem>>) attributes {dimension_semantics = [#tpu.dimension_semantics<parallel>], iteration_bounds = array<i64: 1>, scalar_prefetch = 0 : i64, scratch_operands = 0 : i64, tpu.core_type = #tpu.core_type<tc>, window_params = [{transform_indices = @transform_0, window_bounds = array<i64: 16, 256>}, {transform_indices = @transform_1, window_bounds = array<i64: 8, 256>}, {pipeline_mode = #tpu.pipeline_mode<synchronous>, transform_indices = @transform_2, window_bounds = array<i64: 32, 16>}, {pipeline_mode = #tpu.pipeline_mode<synchronous>, transform_indices = @transform_3, window_bounds = array<i64: 32, 8>}, {pipeline_mode = #tpu.pipeline_mode<synchronous>, transform_indices = @transform_4, window_bounds = array<i64: 32, 1>}, {pipeline_mode = #tpu.pipeline_mode<synchronous>, transform_indices = @transform_5, window_bounds = array<i64: 32, 32>}, {pipeline_mode = #tpu.pipeline_mode<synchronous>, transform_indices = @transform_6, window_bounds = array<i64: 32, 1>}, {pipeline_mode = #tpu.pipeline_mode<synchronous>, transform_indices = @transform_7, window_bounds = array<i64: 32, 1>}, {pipeline_mode = #tpu.pipeline_mode<synchronous>, transform_indices = @transform_8, window_bounds = array<i64: 1, 1>}, {transform_indices = @transform_9, window_bounds = array<i64: 1, 256>}]} {
    %c0 = arith.constant 0 : index
    %c0_0 = arith.constant 0 : index
    %0 = vector.load %arg1[%c0, %c0_0] : memref<16x256xf32, #tpu.memory_space<vmem>>, vector<16x256xf32>
    %c0_1 = arith.constant 0 : index
    %c0_2 = arith.constant 0 : index
    %1 = vector.load %arg2[%c0_1, %c0_2] : memref<8x256xf32, #tpu.memory_space<vmem>>, vector<8x256xf32>
    %c0_3 = arith.constant 0 : index
    %c0_4 = arith.constant 0 : index
    %2 = vector.load %arg3[%c0_3, %c0_4] : memref<32x16xf32, #tpu.memory_space<vmem>>, vector<32x16xf32>
    %cst = arith.constant dense<0.000000e+00> : vector<32x256xf32>
    %3 = tpu.matmul %2, %0, %cst {dimension_numbers = #tpu.dot_dimension_numbers<[1], [0], [0], [1], [0, 0, 1, 1], [], []>} : vector<32x16xf32>, vector<16x256xf32>, vector<32x256xf32> -> vector<32x256xf32>
    %c0_5 = arith.constant 0 : index
    %c0_6 = arith.constant 0 : index
    %4 = vector.load %arg4[%c0_5, %c0_6] : memref<32x8xf32, #tpu.memory_space<vmem>>, vector<32x8xf32>
    %cst_7 = arith.constant dense<0.000000e+00> : vector<32x256xf32>
    %5 = tpu.matmul %4, %1, %cst_7 {dimension_numbers = #tpu.dot_dimension_numbers<[1], [0], [0], [1], [0, 0, 1, 1], [], []>} : vector<32x8xf32>, vector<8x256xf32>, vector<32x256xf32> -> vector<32x256xf32>
    %6 = arith.addf %3, %5 : vector<32x256xf32>
    %c0_8 = arith.constant 0 : index
    %c0_9 = arith.constant 0 : index
    %7 = vector.load %arg5[%c0_8, %c0_9] : memref<32x1xf32, #tpu.memory_space<vmem>>, vector<32x1xf32>
    %8 = vector.broadcast %7 : vector<32x1xf32> to vector<32x256xf32>
    %9 = arith.addf %6, %8 : vector<32x256xf32>
    %cst_10 = arith.constant 0.000000e+00 : f32
    %10 = vector.broadcast %cst_10 : f32 to vector<32x256xf32>
    %11 = arith.maximumf %9, %10 : vector<32x256xf32>
    %c0_11 = arith.constant 0 : index
    %c0_12 = arith.constant 0 : index
    %12 = vector.load %arg6[%c0_11, %c0_12] : memref<32x32xf32, #tpu.memory_space<vmem>>, vector<32x32xf32>
    %cst_13 = arith.constant dense<0.000000e+00> : vector<32x256xf32>
    %13 = tpu.matmul %12, %11, %cst_13 {dimension_numbers = #tpu.dot_dimension_numbers<[1], [0], [0], [1], [0, 0, 1, 1], [], []>} : vector<32x32xf32>, vector<32x256xf32>, vector<32x256xf32> -> vector<32x256xf32>
    %c0_14 = arith.constant 0 : index
    %c0_15 = arith.constant 0 : index
    %14 = vector.load %arg7[%c0_14, %c0_15] : memref<32x1xf32, #tpu.memory_space<vmem>>, vector<32x1xf32>
    %15 = vector.broadcast %14 : vector<32x1xf32> to vector<32x256xf32>
    %16 = arith.addf %13, %15 : vector<32x256xf32>
    %cst_16 = arith.constant 0.000000e+00 : f32
    %17 = vector.broadcast %cst_16 : f32 to vector<32x256xf32>
    %18 = arith.maximumf %16, %17 : vector<32x256xf32>
    %c0_17 = arith.constant 0 : index
    %c0_18 = arith.constant 0 : index
    %19 = vector.load %arg8[%c0_17, %c0_18] : memref<32x1xf32, #tpu.memory_space<vmem>>, vector<32x1xf32>
    %20 = vector.broadcast %19 : vector<32x1xf32> to vector<32x256xf32>
    %21 = arith.mulf %18, %20 : vector<32x256xf32>
    %cst_19 = arith.constant dense<0.000000e+00> : vector<256xf32>
    %22 = vector.multi_reduction <add>, %21, %cst_19 [0] : vector<32x256xf32> to vector<256xf32>
    %23 = vector.shape_cast %22 : vector<256xf32> to vector<1x256xf32>
    %c0_20 = arith.constant 0 : index
    %c0_21 = arith.constant 0 : index
    %24 = vector.load %arg9[%c0_20, %c0_21] : memref<1x1xf32, #tpu.memory_space<vmem>>, vector<1x1xf32>
    %25 = vector.broadcast %24 : vector<1x1xf32> to vector<1x256xf32>
    %26 = arith.addf %23, %25 : vector<1x256xf32>
    %c0_22 = arith.constant 0 : index
    %c0_23 = arith.constant 0 : index
    %27 = vector.load %arg10[%c0_22, %c0_23] : memref<1x256xf32, #tpu.memory_space<vmem>>, vector<1x256xf32>
    tpu.vector_store %arg10[%c0_22, %c0_23], %26 {strides = array<i32>} : memref<1x256xf32, #tpu.memory_space<vmem>>, vector<1x256xf32>,
    return
  }
  func.func @transform_0(%arg0: i32) -> (i32, i32) {
    %c0_i32 = arith.constant 0 : i32
    %c0_i32_0 = arith.constant 0 : i32
    return %c0_i32, %arg0 : i32, i32
  }
  func.func @transform_1(%arg0: i32) -> (i32, i32) {
    %c0_i32 = arith.constant 0 : i32
    %c0_i32_0 = arith.constant 0 : i32
    return %c0_i32, %arg0 : i32, i32
  }
  func.func @transform_2(%arg0: i32) -> (i32, i32) {
    %c0_i32 = arith.constant 0 : i32
    %c0_i32_0 = arith.constant 0 : i32
    %c0_i32_1 = arith.constant 0 : i32
    return %c0_i32, %c0_i32_0 : i32, i32
  }
  func.func @transform_3(%arg0: i32) -> (i32, i32) {
    %c0_i32 = arith.constant 0 : i32
    %c0_i32_0 = arith.constant 0 : i32
    %c0_i32_1 = arith.constant 0 : i32
    return %c0_i32, %c0_i32_0 : i32, i32
  }
  func.func @transform_4(%arg0: i32) -> (i32, i32) {
    %c0_i32 = arith.constant 0 : i32
    %c0_i32_0 = arith.constant 0 : i32
    %c0_i32_1 = arith.constant 0 : i32
    return %c0_i32, %c0_i32_0 : i32, i32
  }
  func.func @transform_5(%arg0: i32) -> (i32, i32) {
    %c0_i32 = arith.constant 0 : i32
    %c0_i32_0 = arith.constant 0 : i32
    %c0_i32_1 = arith.constant 0 : i32
    return %c0_i32, %c0_i32_0 : i32, i32
  }
  func.func @transform_6(%arg0: i32) -> (i32, i32) {
    %c0_i32 = arith.constant 0 : i32
    %c0_i32_0 = arith.constant 0 : i32
    %c0_i32_1 = arith.constant 0 : i32
    return %c0_i32, %c0_i32_0 : i32, i32
  }
  func.func @transform_7(%arg0: i32) -> (i32, i32) {
    %c0_i32 = arith.constant 0 : i32
    %c0_i32_0 = arith.constant 0 : i32
    %c0_i32_1 = arith.constant 0 : i32
    return %c0_i32, %c0_i32_0 : i32, i32
  }
  func.func @transform_8(%arg0: i32) -> (i32, i32) {
    %c0_i32 = arith.constant 0 : i32
    %c0_i32_0 = arith.constant 0 : i32
    %c0_i32_1 = arith.constant 0 : i32
    return %c0_i32, %c0_i32_0 : i32, i32
  }
  func.func @transform_9(%arg0: i32) -> (i32, i32) {
    %c0_i32 = arith.constant 0 : i32
    %c0_i32_0 = arith.constant 0 : i32
    return %c0_i32, %arg0 : i32, i32
  }
}

</mosaic_0001>

<bundles_post_ra>
// kernel: tpu_custom_call.1
= control target key start
LH: loop header
LB: loop body
LE: loop exit
PB: predicated region body
PF: predicated region fallthrough
CT: control target
= control target key end

     0   :  { %s773_s0 = inlined_call_operand.vmem [shape: f32[16,256], index: 0, kind: input, shape index: {}]   ;;  %s774_s1 = inlined_call_operand.vmem [shape: f32[8,256], index: 1, kind: input, shape index: {}]   ;;  %s775_s2 = inlined_call_operand.vmem [shape: f32[32,16], index: 2, kind: input, shape index: {}]   ;;  %s776_s3 = inlined_call_operand.vmem [shape: f32[32,8], index: 3, kind: input, shape index: {}]   ;;  %s777_s4 = inlined_call_operand.vmem [shape: f32[32,1], index: 4, kind: input, shape index: {}]   ;;  %s778_s5 = inlined_call_operand.vmem [shape: f32[32,32], index: 5, kind: input, shape index: {}]   ;;  %s779_s6 = inlined_call_operand.vmem [shape: f32[32,1], index: 6, kind: input, shape index: {}]   ;;  %s780_s7 = inlined_call_operand.vmem [shape: f32[32,1], index: 7, kind: input, shape index: {}]   ;;  %s781_s8 = inlined_call_operand.<no memory space> [shape: f32[1,1], index: 8, kind: input, shape index: {}]   ;;  %s782_s9 = inlined_call_operand.hbm [shape: f32[1,256], index: 9, kind: output, shape index: {}]  }
   0x1   :  { %v14_v0 = vstv %s781_s8 }
   0x2   :  { %15 = vst [vmem:[#allocation2] sm:$0x1] %v14_v0 }
   0x3   :  { %v40_v1 = vld [vmem:[%s774_s1 + $0x8] sm:$0xff]  ;;  %v39_v2 = vld [vmem:[%s774_s1] sm:$0xff]  ;;  %vm49_vm0 = vcmask 64512   ;;  %v594_v4 = vmov 0.0   ;;  %v38_v6 = vld [vmem:[%s773_s0 + $0x18] sm:$0xff]  ;;  %v595_v14 = vmov 0  }
   0x4   :  { %v45_v3 = vld [vmem:[%s776_s3] sm:$0xff]  ;;  %62 = vmatprep.subr.mxu0 %v40_v1  ;;  %126 = vmatprep.mubr.f32.mxu0 %v594_v4  ;;  %v36_v5 = vld [vmem:[%s773_s0 + $0x8] sm:$0xff]  ;;  %v37_v9 = vld [vmem:[%s773_s0 + $0x10] sm:$0xff]  ;;  %vm151_vm1 = vcmask 130048  }
   0x5   :  { %v35_v7 = vld [vmem:[%s773_s0] sm:$0xff]  ;;  %63 = vmatpush1.msra.mxu0 %v39_v2  ;;  %v542_v8 = vpack.c.bf16 %v38_v6, %v36_v5  ;;  %554 = vmatprep.subr.mxu1 %v40_v1  ;;  %v47_v11 = vld [vmem:[%s776_s3 + $0x10] sm:$0xff]  ;;  %v46_v12 = vld [vmem:[%s776_s3 + $0x8] sm:$0xff] }
   0x6   :  { %530 = vmatmul.mubr.msk.f32.vlgmr.msra.gmra.mrb[0].mxu0 %vm49_vm0, %v45_v3  ;;  %v544_v10 = vpack.c.bf16 %v37_v9, %v35_v7  ;;  %555 = vmatpush1.msra.mxu1 %v39_v2  ;;  %v253_v13 = vld [vmem:[%s777_s4] sm:$0xff]  ;;  %v48_v15 = vld [vmem:[%s776_s3 + $0x18] sm:$0xff]  ;;  %v255_v16 = vld [vmem:[%s777_s4 + $0x10] sm:$0xff] }
   0x7   :  { %543 = vmatprep.subr.bf16.mxu0 %v542_v8  ;;  %132 = vmatprep.mubr.f32.mxu0 %v594_v4  ;;  %v41_v17 = vld [vmem:[%s775_s2] sm:$0xff]  ;;  %v254_v18 = vld [vmem:[%s777_s4 + $0x8] sm:$0xff] }
   0x8   :  { %545 = vmatpush1.bf16.msra.mxu0 %v544_v10  ;;  %138 = vmatprep.mubr.f32.mxu1 %v594_v4 }
   0x9   :  { %532 = vmatmul.mubr.msk.f32.vlgmr.msra.gmra.mrb[0].mxu1 %vm49_vm0, %v47_v11  ;;  %568 = vset.pattern.permute.xlu0 %v595_v14 }
   0xa   :  { %531 = vmatmul.mubr.msk.f32.gmra.mrb[2].mxu0 %vm49_vm0, %v46_v12  ;;  %144 = vmatprep.mubr.f32.mxu1 %v594_v4 }
   0xb   :  { %228 = vmatprep.mubr.f32.mxu0 %v594_v4  ;;  %259 = vperm.xlu0 %568, %v253_v13  }
   0xc   :  { %569 = vset.pattern.permute.xlu1 %v595_v14 }
   0xd   :  { %16 = vsyncpa [#allocation4], 0  ;;  %533 = vmatmul.mubr.msk.f32.gmra.mrb[2].mxu1 %vm49_vm0, %v48_v15  ;;  %269 = vperm.xlu1 %569, %v255_v16   ;;  %v256_v19 = vld [vmem:[%s777_s4 + $0x18] sm:$0xff]  ;;  %v42_v20 = vld [vmem:[%s775_s2 + $0x8] sm:$0xff]  ;;  %vm321_vm2 = vcmask 261120  }
   0xe   :  { %534 = vmatmul.mubr.msk.f32.vlgmr.msra.gmra.mrb[0].mxu0 %vm151_vm1, %v41_v17  ;;  %398 = vmatprep.mubr.f32.mxu1 %v594_v4  ;;  %v297_v21 = vld [vmem:[%s779_s6] sm:$0xff]  ;;  %v298_v22 = vld [vmem:[%s779_s6 + $0x8] sm:$0xff]  ;;  %v43_v23 = vld [vmem:[%s775_s2 + $0x10] sm:$0xff] }
   0xf   :  { %234 = vmatprep.mubr.f32.mxu0 %v594_v4  ;;  %264 = vperm.xlu0 %568, %v254_v18   ;;  %v299_v24 = vld [vmem:[%s779_s6 + $0x10] sm:$0xff]  ;;  %v300_v25 = vld [vmem:[%s779_s6 + $0x18] sm:$0xff]  ;;  %v431_v27 = vld [vmem:[%s780_s7] sm:$0xff] }
  0x10   :  { %v44_v26 = vld [vmem:[%s775_s2 + $0x18] sm:$0xff]  ;;  %v432_v28 = vld [vmem:[%s780_s7 + $0x8] sm:$0xff]  ;;  %v433_v29 = vld [vmem:[%s780_s7 + $0x10] sm:$0xff] }
  0x11   :  { %274 = vperm.xlu1 %569, %v256_v19   ;;  %v434_v30 = vld [vmem:[%s780_s7 + $0x18] sm:$0xff]  ;;  %v481_v31 = vld [vmem:[#allocation2] sm:$0x1]  ;;  %v294_v10 = vld [vmem:[%s778_s5 + $0x8] sm:$0xff] }
  0x12   :  { %535 = vmatmul.mubr.msk.f32.gmra.mrb[2].mxu0 %vm151_vm1, %v42_v20  ;;  %v293_v9 = vld [vmem:[%s778_s5] sm:$0xff]  ;;  %v295_v11 = vld [vmem:[%s778_s5 + $0x10] sm:$0xff]  ;;  %v296_v12 = vld [vmem:[%s778_s5 + $0x18] sm:$0xff]  ;;  %s597_s5 = smov [#allocation3]  }
  0x13   :  { %240 = vmatprep.mubr.f32.mxu0 %v594_v4  ;;  %303 = vperm.xlu0 %568, %v297_v21   ;;  %s522_s17 = sshll.u32 %s597_s5, 4  ;;  %s523_s17 = int_to_ptr.vmem [resolvable:$true] %s522_s17 }
  0x14   :  { %s570_s8 = scalar_lea.vmem %s523_s17, 32  ;;  %p575_p1 = scmp.lt.s32.totalorder %s523_s17, %s523_s17 }
  0x15   :  { %308 = vperm.xlu1 %569, %v298_v22   ;;  %p571_p0 = scmp.ne.s32.totalorder %s523_s17, %s570_s8  ;;  %p576_p2 = scmp.lt.s32.totalorder %s570_s8, %s570_s8 }
  0x16   :  { %536 = vmatmul.mubr.msk.f32.gmra.mrb[4].mxu0 %vm151_vm1, %v43_v23 }
  0x17   :  { %246 = vmatprep.mubr.f32.mxu0 %v594_v4  ;;  %313 = vperm.xlu0 %568, %v299_v24   ;;  %p577_p3 = por %p576_p2, %p575_p1 }
  0x19   :  { %318 = vperm.xlu1 %569, %v300_v25   ;;  %p578_p4 = pnand %p577_p3, %p571_p0 }
  0x1a   :  { %537 = vmatmul.mubr.msk.f32.gmra.mrb[6].mxu0 %vm151_vm1, %v44_v26 }
  0x1b   :  { %437 = vperm.xlu0 %568, %v431_v27  }
  0x1d   :  { %442 = vperm.xlu1 %569, %v432_v28  }
  0x1f   :  { %447 = vperm.xlu0 %568, %v433_v29  }
  0x21   :  { %452 = vperm.xlu1 %569, %v434_v30  }
  0x23   :  { %484 = vperm.xlu0 %568, %v481_v31  }
  0x8a   :  { %v260_v34 = vpop.permute.xlu0 %259 }
  0x8c   :  { %v270_v48 = vpop.permute.xlu1 %269 }
  0x8e   :  { %v265_v40 = vpop.permute.xlu0 %264 }
  0x90   :  { %v275_v61 = vpop.permute.xlu1 %274 }
  0x92   :  { %v304_v13 = vpop.permute.xlu0 %303 }
  0x94   :  { %v309_v14 = vpop.permute.xlu1 %308 }
  0x96   :  { %v314_v15 = vpop.permute.xlu0 %313 }
  0x98   :  { %v319_v19 = vpop.permute.xlu1 %318 }
  0x9a   :  { %v438_v25 = vpop.permute.xlu0 %437 }
  0x9c   :  { %v443_v28 = vpop.permute.xlu1 %442 }
  0xdc   :  { %v140_v32 = vpop.f32.mrb[0].mxu1 }
  0xdd   :  { %v142_v33 = vpop.f32.mrb[1].mxu1 }
  0xe0   :  { %v146_v35 = vpop.f32.mrb[2].mxu1 }
  0xe1   :  { %v230_v36 = vpop.f32.mrb[0].mxu0  ;;  %v148_v37 = vpop.f32.mrb[3].mxu1 }
  0xe2   :  { %v232_v38 = vpop.f32.mrb[1].mxu0  ;;  %v277_v39 = vadd.f32 %v260_v34, %v230_v36 }
  0xe3   :  { %v278_v41 = vadd.f32 %v260_v34, %v232_v38 }
  0xe4   :  { %v285_v46 = vmax.f32 %v277_v39, 0.0 }
  0xe5   :  { %v236_v42 = vpop.f32.mrb[2].mxu0  ;;  %v286_v49 = vmax.f32 %v278_v41, 0.0 }
  0xe6   :  { %v279_v43 = vadd.f32 %v265_v40, %v236_v42  ;;  %v238_v44 = vpop.f32.mrb[3].mxu0 }
  0xe7   :  { %v280_v45 = vadd.f32 %v265_v40, %v238_v44  ;;  %v448_v40 = vpop.permute.xlu0 %447 }
  0xe8   :  { %v287_v47 = vmax.f32 %v279_v43, 0.0 }
  0xe9   :  { %v288_v50 = vmax.f32 %v280_v45, 0.0  ;;  %v242_v51 = vpop.f32.mrb[4].mxu0 }
  0xea   :  { %v548_v52 = vpack.c.bf16 %v287_v47, %v285_v46  ;;  %v243_v53 = vadd.f32 %v242_v51, %v140_v32  ;;  %v244_v54 = vpop.f32.mrb[5].mxu0  ;;  %v453_v51 = vpop.permute.xlu1 %452 }
  0xeb   :  { %v546_v55 = vpack.c.bf16 %v288_v50, %v286_v49  ;;  %v245_v56 = vadd.f32 %v244_v54, %v142_v33 }
  0xec   :  { %v281_v58 = vadd.f32 %v270_v48, %v243_v53 }
  0xed   :  { %v248_v57 = vpop.f32.mrb[6].mxu0  ;;  %547 = vmatprep.subr.bf16.mxu1 %v546_v55  ;;  %v282_v62 = vadd.f32 %v270_v48, %v245_v56  ;;  %v487_v56 = vlaneseq }
  0xee   :  { %v249_v59 = vadd.f32 %v248_v57, %v146_v35  ;;  %v250_v60 = vpop.f32.mrb[7].mxu0  ;;  %549 = vmatpush1.bf16.msra.mxu1 %v548_v52  ;;  %v289_v2 = vmax.f32 %v281_v58, 0.0 }
  0xef   :  { %v251_v63 = vadd.f32 %v250_v60, %v148_v37  ;;  %v290_v5 = vmax.f32 %v282_v62, 0.0  ;;  %vm513_vm3 = vcmp.lt.s32.totalorder %v487_v56, 256 }
  0xf0   :  { %v283_v0 = vadd.f32 %v275_v61, %v249_v59 }
  0xf1   :  { %v284_v1 = vadd.f32 %v275_v61, %v251_v63  ;;  %v488_v61 = vshrl.u32 %v487_v56, 7 }
  0xf2   :  { %v291_v3 = vmax.f32 %v283_v0, 0.0 }
  0xf3   :  { %v292_v6 = vmax.f32 %v284_v1, 0.0 }
  0xf4   :  { %v552_v7 = vpack.c.bf16 %v291_v3, %v289_v2  ;;  %v596_v2 = vmov 1966171168  }
  0xf5   :  { %v550_v8 = vpack.c.bf16 %v292_v6, %v290_v5  ;;  %v497_v3 = vunpack.c.l.s4 %v596_v2  ;;  %v489_v5 = vsub.s32 0, %v488_v61 }
  0xf7   :  { %551 = vmatprep.subr.bf16.mxu1 %v550_v8 }
  0xf8   :  { %553 = vmatpush1.bf16.msra.mxu1 %v552_v7  ;;  %v485_v7 = vpop.permute.xlu0 %484 }
  0xfb   :  { %538 = vmatmul.mubr.msk.f32.vlgmr.msra.gmra.mrb[4].mxu1 %vm321_vm2, %v293_v9 }
  0xfc   :  { %404 = vmatprep.mubr.f32.mxu1 %v594_v4 }
  0xff   :  { %539 = vmatmul.mubr.msk.f32.gmra.mrb[6].mxu1 %vm321_vm2, %v294_v10 }
 0x100   :  { %410 = vmatprep.mubr.f32.mxu1 %v594_v4 }
 0x103   :  { %540 = vmatmul.mubr.msk.f32.gmra.mrb[8].mxu1 %vm321_vm2, %v295_v11  ;;  %v498_v11 = vunpack.c.0.s8 %v497_v3 }
 0x104   :  { %416 = vmatprep.mubr.f32.mxu1 %v594_v4 }
 0x107   :  { %541 = vmatmul.mubr.msk.f32.gmra.mrb[10].mxu1 %vm321_vm2, %v296_v12  ;;  %v490_v12 = vrot.slane %v485_v7, %v489_v5 }
 0x1ce   :  { %v400_v16 = vpop.f32.mrb[4].mxu1 }
 0x1cf   :  { %v401_v17 = vadd.f32 %v400_v16, %v304_v13  ;;  %v402_v18 = vpop.f32.mrb[5].mxu1 }
 0x1d0   :  { %v403_v20 = vadd.f32 %v402_v18, %v304_v13 }
 0x1d1   :  { %v423_v22 = vmax.f32 %v401_v17, 0.0  ;;  %v501_v17 = vsub.s32 %v498_v11, %v488_v61 }
 0x1d2   :  { %v406_v21 = vpop.f32.mrb[6].mxu1  ;;  %v424_v26 = vmax.f32 %v403_v20, 0.0 }
 0x1d3   :  { %v407_v23 = vadd.f32 %v406_v21, %v309_v14  ;;  %v408_v24 = vpop.f32.mrb[7].mxu1  ;;  %v455_v31 = vmul.f32 %v438_v25, %v423_v22 }
 0x1d4   :  { %v409_v4 = vadd.f32 %v408_v24, %v309_v14  ;;  %v456_v35 = vmul.f32 %v438_v25, %v424_v26 }
 0x1d5   :  { %v425_v27 = vmax.f32 %v407_v23, 0.0 }
 0x1d6   :  { %v426_v29 = vmax.f32 %v409_v4, 0.0  ;;  %v412_v30 = vpop.f32.mrb[8].mxu1 }
 0x1d7   :  { %v457_v32 = vmul.f32 %v443_v28, %v425_v27  ;;  %v413_v33 = vadd.f32 %v412_v30, %v314_v15  ;;  %v414_v34 = vpop.f32.mrb[9].mxu1 }
 0x1d8   :  { %v458_v36 = vmul.f32 %v443_v28, %v426_v29  ;;  %v415_v37 = vadd.f32 %v414_v34, %v314_v15 }
 0x1d9   :  { %v463_v38 = vadd.f32 %v457_v32, %v455_v31  ;;  %v427_v39 = vmax.f32 %v413_v33, 0.0 }
 0x1da   :  { %v472_v41 = vadd.f32 %v458_v36, %v456_v35  ;;  %v428_v42 = vmax.f32 %v415_v37, 0.0  ;;  %v418_v43 = vpop.f32.mrb[10].mxu1 }
 0x1db   :  { %v459_v44 = vmul.f32 %v448_v40, %v427_v39  ;;  %v419_v45 = vadd.f32 %v418_v43, %v319_v19  ;;  %v420_v46 = vpop.f32.mrb[11].mxu1 }
 0x1dc   :  { %v460_v47 = vmul.f32 %v448_v40, %v428_v42  ;;  %v421_v48 = vadd.f32 %v420_v46, %v319_v19 }
 0x1dd   :  { %v464_v49 = vadd.f32 %v463_v38, %v459_v44  ;;  %v429_v50 = vmax.f32 %v419_v45, 0.0 }
 0x1de   :  { %v473_v52 = vadd.f32 %v472_v41, %v460_v47  ;;  %v430_v53 = vmax.f32 %v421_v48, 0.0 }
 0x1df   :  { %v461_v54 = vmul.f32 %v453_v51, %v429_v50 }
 0x1e0   :  { %v462_v55 = vmul.f32 %v453_v51, %v430_v53 }
 0x1e1   :  { %v465_v57 = vadd.f32 %v464_v49, %v461_v54 }
 0x1e2   :  { %v474_v58 = vadd.f32 %v473_v52, %v462_v55 }
 0x1e3   :  { %v466_v59 = vrot.slane %v465_v57, 4 }
 0x1e4   :  { %v475_v60 = vrot.slane %v474_v58, 4 }
 0x1e5   :  { %v467_v62 = vadd.f32 %v466_v59, %v465_v57 }
 0x1e6   :  { %v476_v63 = vadd.f32 %v475_v60, %v474_v58 }
 0x1e7   :  { %v468_v0 = vrot.slane %v467_v62, 2 }
 0x1e8   :  { %v477_v1 = vrot.slane %v476_v63, 2 }
 0x1e9   :  { %v469_v6 = vadd.f32 %v468_v0, %v467_v62 }
 0x1ea   :  { %v478_v8 = vadd.f32 %v477_v1, %v476_v63 }
 0x1eb   :  { %v470_v9 = vrot.slane %v469_v6, 1 }
 0x1ec   :  { %v479_v10 = vrot.slane %v478_v8, 1 }
 0x1ed   :  { %v471_v13 = vadd.f32 %v470_v9, %v469_v6 }
 0x1ee   :  { %v480_v14 = vadd.f32 %v479_v10, %v478_v8 }
 0x1ef   :  { %v491_v15 = vadd.f32 %v490_v12, %v471_v13 }
 0x1f0   :  { %v492_v16 = vadd.f32 %v490_v12, %v480_v14 }
 0x1f2   :  { %v495_v18 = vcombine.low %v491_v15, %v492_v16 }
 0x1f4   :  { %v502_v19 = vrot.slane %v495_v18, %v501_v17 }
 0x1f6   :  { %v509_v20 = vrot.slane %v502_v19, %v501_v17 }
 0x1f8   :  { %515 = vst.msk [vmem:[#allocation3] sm:$0x3] %vm513_vm3, %v509_v20 }
 0x1f9   :  { %581 = shalt.err (!%p578_p4)
}
 0x1fa   :  { %s582_s20 = scalar_lea.hbm %s782_s9, 32 }
 0x1fb   :  { %p583_p5 = scmp.ne.s32.totalorder %s782_s9, %s582_s20  ;;  %p586_p6 = scmp.lt.u32.totalorder %s582_s20, %s782_s9 }
 0x1fd   :  { %p588_p7 = pnand %p586_p6, %p583_p5 }
 0x1ff   :  { %591 = shalt.err (!%p588_p7)
}
 0x200   :  { %525 = dma.vmem_to_hbm [thread:$0]  %s523_s17, 32, %s782_s9, [#allocation4]  }
 0x201   :  { %592 = dma.done.wait [#allocation4], 32  }
 0x202   :  { %593 = vsyncadd [#allocation4], 4294967264 }
 0x203   :  { %529 = vsyncpa [#allocation4], 1 }

</bundles_post_ra>
